<compile_context>
chip_gen: v5e
topology: v5e:2x2
jax: 0.10.0
libtpu: 0.0.40
codegen_flags: <defaults>
</compile_context>

<pallas_src>
import jax
import jax.numpy as jnp
from jax.experimental import pallas as pl
from jax.experimental.pallas import tpu as pltpu


def _round_up(x, m):
    return (x + m - 1) // m * m


def _cdiv(a, b):
    return (a + b - 1) // b


def _sublane(dtype):
    itemsize = jnp.dtype(dtype).itemsize
    return 8 if itemsize >= 4 else (16 if itemsize == 2 else 32)


# ----------------------------- kernels ---------------------------------------


def _fused_kernel(x_ref, wf_ref, bf_ref, o_ref):
    # Folded affine map: out = x @ (W0 @ W1) + (b0 @ W1 + b1); f32 accumulation on MXU.
    out = jnp.dot(x_ref[...].astype(wf_ref.dtype), wf_ref[...],
                  preferred_element_type=jnp.float32)
    o_ref[...] = (out + bf_ref[...]).astype(o_ref.dtype)


def _two_layer_kernel(x_ref, w0_ref, b0_ref, w1_ref, b1_ref, o_ref, h_ref):
    # fc0 intermediate is computed once per batch tile (on the first class tile) into a
    # planned VMEM scratch, then reused for every class tile of that batch tile.
    @pl.when(pl.program_id(1) == 0)
    def _():
        h = jnp.dot(x_ref[...].astype(w0_ref.dtype), w0_ref[...],
                    preferred_element_type=jnp.float32)
        h_ref[...] = h + b0_ref[...]

    out = jnp.dot(h_ref[...].astype(w1_ref.dtype), w1_ref[...],
                  preferred_element_type=jnp.float32)
    o_ref[...] = (out + b1_ref[...]).astype(o_ref.dtype)


# ----------------------------- one-time weight prep ----------------------------


def prepare_params(w0, b0, w1, b1, *, compute_dtype=jnp.bfloat16, fold=None):
    """One-time weight preprocessing.  Call once (at init), NOT per forward call.

    w0 : [input_dim, bottleneck]  (torch fc0.weight transposed)
    b0 : [bottleneck]
    w1 : [bottleneck, class_num]  (torch fc1.weight transposed)
    b1 : [class_num]
    compute_dtype : matmul operand dtype (bf16 recommended); accumulation is always f32.
    fold : force fc0/fc1 folding on/off; None -> fold only when it reduces both MXU
           FLOPs and weight DMA bytes.  Note: folding then casting to bf16 is slightly
           different numerically from casting W0/W1 separately (documented tradeoff).
    """
    input_dim, bottleneck = w0.shape
    class_num = w1.shape[1]
    cdt = jnp.dtype(compute_dtype)

    # Lane-dense class dim: zero-pad to a multiple of 128 so stores are full-lane vst.
    n_pad = _round_up(max(class_num, 128), 128)
    w1p = jnp.pad(w1.astype(jnp.float32), ((0, 0), (0, n_pad - class_num)))
    b1p = jnp.pad(b1.astype(jnp.float32), (0, n_pad - class_num))

    if fold is None:
        # Fold is a win only when x @ (W0@W1) is cheaper than the two matmuls.
        fold = input_dim * n_pad <= input_dim * bottleneck + bottleneck * n_pad

    params = dict(fold=bool(fold), input_dim=input_dim, bottleneck=bottleneck,
                  class_num=class_num, n_pad=n_pad)
    if fold:
        # No activation between fc0 and fc1 -> fold once (f32, HIGHEST precision).
        hi = jax.lax.Precision.HIGHEST
        wf = jnp.dot(w0.astype(jnp.float32), w1p, precision=hi)
        bf = (jnp.dot(b0.astype(jnp.float32).reshape(1, bottleneck), w1p, precision=hi)
              + b1p.reshape(1, n_pad))
        params.update(wf=wf.astype(cdt), bf=bf)                       # bias stays f32
    else:
        params.update(w0=w0.astype(cdt),
                      b0=b0.astype(jnp.float32).reshape(1, bottleneck),
                      w1=w1p.astype(cdt),
                      b1=b1p.reshape(1, n_pad))
    return params


# ----------------------------- forward ------------------------------------------


def feat_classifier_two_forward(x, params, *, block_b=256, block_n=1024):
    """Pallas forward: x [B, input_dim] -> [B, class_num] (x.dtype).

    `params` must come from prepare_params (hoisted weight prep, not per-call).
    """
    B, input_dim = x.shape
    assert input_dim == params["input_dim"], "input_dim mismatch"
    n_pad = params["n_pad"]
    class_num = params["class_num"]
    out_dtype = x.dtype

    # --- batch tiling: no padding copies; Pallas masks the last partial block -------
    sub = _sublane(x.dtype)
    if B >= 2 * block_b:
        tb = block_b
    elif B >= 64:
        # >= 2 batch tiles so the "parallel" axis can shard over v7x's 2 TensorCores.
        tb = min(block_b, _round_up(_cdiv(B, 2), sub))
    else:
        tb = B                      # tiny problem: single tile == full dim, grid stays 1
    grid_b = _cdiv(B, tb)

    # --- class tiling: lane-dense multiple of 128 that divides n_pad ----------------
    bn = max(128, (block_n // 128) * 128)
    if n_pad <= bn:
        tn = n_pad
    else:
        tn = 128
        for cand in range(bn, 0, -128):
            if n_pad % cand == 0:
                tn = cand
                break
    grid_n = n_pad // tn
    grid = (grid_b, grid_n)

    def _wspec(shape, index_map, grid_constant):
        # Grid-constant weight/bias blocks only need a single VMEM buffer.
        if grid_constant:
            return pl.BlockSpec(shape, index_map, pipeline_mode=pl.Buffered(1))
        return pl.BlockSpec(shape, index_map)

    xb = jnp.dtype(x.dtype).itemsize
    ob = jnp.dtype(out_dtype).itemsize

    if params["fold"]:
        wf, bf = params["wf"], params["bf"]
        wb = jnp.dtype(wf.dtype).itemsize
        w_bufs = 1 if grid_n == 1 else 2
        est = (2 * tb * input_dim * xb                       # x tile (double-buffered)
               + w_bufs * (input_dim * tn * wb + tn * 4)     # Wf / bf tiles
               + 2 * tb * tn * ob)                           # out tile (double-buffered)
        vmem_limit = int(min(64 << 20, max(est + (4 << 20), 16 << 20)))
        out_p = pl.pallas_call(
            _fused_kernel,
            out_shape=jax.ShapeDtypeStruct((B, n_pad), out_dtype),
            grid=grid,
            in_specs=[
                pl.BlockSpec((tb, input_dim), lambda i, j: (i, 0)),
                _wspec((input_dim, tn), lambda i, j: (0, j), grid_n == 1),
                _wspec((1, tn), lambda i, j: (0, j), grid_n == 1),
            ],
            out_specs=pl.BlockSpec((tb, tn), lambda i, j: (i, j)),
            compiler_params=pltpu.CompilerParams(
                dimension_semantics=("parallel", "parallel"),
                vmem_limit_bytes=vmem_limit),
        )(x, wf, bf)
    else:
        bott = params["bottleneck"]
        w0, b0, w1, b1 = params["w0"], params["b0"], params["w1"], params["b1"]
        wb = jnp.dtype(w0.dtype).itemsize
        w1_bufs = 1 if grid_n == 1 else 2
        est = (2 * tb * input_dim * xb
               + input_dim * bott * wb + bott * 4            # W0 / b0 (single-buffered)
               + w1_bufs * (bott * tn * wb + tn * 4)         # W1 / b1 tiles
               + 2 * tb * tn * ob
               + tb * bott * 4)                              # h scratch (f32)
        vmem_limit = int(min(64 << 20, max(est + (4 << 20), 16 << 20)))
        out_p = pl.pallas_call(
            _two_layer_kernel,
            out_shape=jax.ShapeDtypeStruct((B, n_pad), out_dtype),
            grid=grid,
            in_specs=[
                pl.BlockSpec((tb, input_dim), lambda i, j: (i, 0)),
                _wspec((input_dim, bott), lambda i, j: (0, 0), True),   # W0 resident
                _wspec((1, bott), lambda i, j: (0, 0), True),           # b0 resident
                _wspec((bott, tn), lambda i, j: (0, j), grid_n == 1),   # W1 class tile
                _wspec((1, tn), lambda i, j: (0, j), grid_n == 1),      # b1 class tile
            ],
            out_specs=pl.BlockSpec((tb, tn), lambda i, j: (i, j)),
            scratch_shapes=[pltpu.VMEM((tb, bott), jnp.float32)],
            compiler_params=pltpu.CompilerParams(
                dimension_semantics=("parallel", "arbitrary"),
                vmem_limit_bytes=vmem_limit),
        )(x, w0, b0, w1, b1)

    if class_num == n_pad:
        return out_p
    return out_p[:, :class_num]     # drop zero-padded class columns


# ----------------------------- params (mimics init_weights) --------------------


def init_params(key, class_num, input_dim, bottleneck_dim=256, dtype=jnp.float32):
    """xavier_normal_ weights, zero biases; weights stored [in, out] (torch W^T)."""
    k0, k1 = jax.random.split(key, 2)

    def xavier_normal(k, fan_in, fan_out):
        std = (2.0 / (fan_in + fan_out)) ** 0.5
        return (std * jax.random.normal(k, (fan_in, fan_out))).astype(dtype)

    w0 = xavier_normal(k0, input_dim, bottleneck_dim)
    b0 = jnp.zeros((bottleneck_dim,), dtype)
    w1 = xavier_normal(k1, bottleneck_dim, class_num)
    b1 = jnp.zeros((class_num,), dtype)
    return w0, b0, w1, b1


if __name__ == "__main__":
    key = jax.random.PRNGKey(0)
    kx, kp, kb0, kb1, kx2, kp2, kb2, kb3 = jax.random.split(key, 8)

    # --- config 1: class_num < bottleneck -> fold is auto-enabled --------------------
    batch, input_dim, bottleneck_dim, class_num = 8, 32, 256, 10
    x = jax.random.normal(kx, (batch, input_dim), dtype=jnp.float32)
    w0, b0, w1, b1 = init_params(kp, class_num, input_dim, bottleneck_dim)
    # init_weights zero-inits biases; use nonzero biases to exercise the bias path.
    b0 = 0.1 * jax.random.normal(kb0, (bottleneck_dim,), dtype=jnp.float32)
    b1 = 0.1 * jax.random.normal(kb1, (class_num,), dtype=jnp.float32)
    ref = (x @ w0 + b0) @ w1 + b1

    p_fold_f32 = prepare_params(w0, b0, w1, b1, compute_dtype=jnp.float32)
    assert p_fold_f32["fold"]                     # heuristic folds (n_pad <= bottleneck)
    out_fold = jax.block_until_ready(feat_classifier_two_forward(x, p_fold_f32))

    p_two_f32 = prepare_params(w0, b0, w1, b1, compute_dtype=jnp.float32, fold=False)
    out_two = jax.block_until_ready(feat_classifier_two_forward(x, p_two_f32))

    p_bf16 = prepare_params(w0, b0, w1, b1)       # default bf16 operands, f32 accumulate
    out_bf16 = jax.block_until_ready(feat_classifier_two_forward(x, p_bf16))

    assert out_fold.shape == (batch, class_num)
    assert out_two.shape == (batch, class_num)
    assert out_bf16.shape == (batch, class_num)
    assert jnp.allclose(out_fold, ref, atol=1e-2, rtol=1e-2)
    assert jnp.allclose(out_two, ref, atol=1e-2, rtol=1e-2)
    assert jnp.allclose(out_bf16, ref, atol=1e-1, rtol=1e-1)

    # --- config 2: wide input, small bottleneck, many classes -> fold auto-disabled,
    #     class axis tiled (block_n=256 forces 3 class tiles of 128) --------------------
    batch2, input_dim2, bott2, class2 = 16, 256, 64, 300
    x2 = jax.random.normal(kx2, (batch2, input_dim2), dtype=jnp.float32)
    w0b, b0b, w1b, b1b = init_params(kp2, class2, input_dim2, bott2)
    b0b = 0.1 * jax.random.normal(kb2, (bott2,), dtype=jnp.float32)
    b1b = 0.1 * jax.random.normal(kb3, (class2,), dtype=jnp.float32)
    ref2 = (x2 @ w0b + b0b) @ w1b + b1b

    p2 = prepare_params(w0b, b0b, w1b, b1b, compute_dtype=jnp.float32)
    assert not p2["fold"]                         # folding would inflate FLOPs / bytes
    out2 = jax.block_until_ready(feat_classifier_two_forward(x2, p2, block_n=256))
    assert out2.shape == (batch2, class2)
    assert jnp.allclose(out2, ref2, atol=1e-2, rtol=1e-2)

    print("KERNEL_OK")
</pallas_src>

<mosaic_0001>
module attributes {stable_mosaic.version = 11 : i64} {
  func.func @_fused_kernel(%arg0: i32, %arg1: i32, %arg2: memref<8x32xf32, #tpu.memory_space<vmem>>, %arg3: memref<32x128xf32, #tpu.memory_space<vmem>>, %arg4: memref<1x128xf32, #tpu.memory_space<vmem>>, %arg5: memref<8x128xf32, #tpu.memory_space<vmem>>) attributes {dimension_semantics = [#tpu.dimension_semantics<parallel>, #tpu.dimension_semantics<parallel>], iteration_bounds = array<i64: 1, 1>, scalar_prefetch = 0 : i64, scratch_operands = 0 : i64, tpu.core_type = #tpu.core_type<tc>, window_params = [{transform_indices = @transform_0, window_bounds = array<i64: 8, 32>}, {pipeline_mode = #tpu.pipeline_mode<synchronous>, transform_indices = @transform_1, window_bounds = array<i64: 32, 128>}, {pipeline_mode = #tpu.pipeline_mode<synchronous>, transform_indices = @transform_2, window_bounds = array<i64: 1, 128>}, {transform_indices = @transform_3, window_bounds = array<i64: 8, 128>}]} {
    %c0 = arith.constant 0 : index
    %c0_0 = arith.constant 0 : index
    %0 = vector.load %arg2[%c0, %c0_0] : memref<8x32xf32, #tpu.memory_space<vmem>>, vector<8x32xf32>
    %c0_1 = arith.constant 0 : index
    %c0_2 = arith.constant 0 : index
    %1 = vector.load %arg3[%c0_1, %c0_2] : memref<32x128xf32, #tpu.memory_space<vmem>>, vector<32x128xf32>
    %cst = arith.constant dense<0.000000e+00> : vector<8x128xf32>
    %2 = tpu.matmul %0, %1, %cst {dimension_numbers = #tpu.dot_dimension_numbers<[1], [0], [0], [1], [0, 0, 1, 1], [], []>} : vector<8x32xf32>, vector<32x128xf32>, vector<8x128xf32> -> vector<8x128xf32>
    %c0_3 = arith.constant 0 : index
    %c0_4 = arith.constant 0 : index
    %3 = vector.load %arg4[%c0_3, %c0_4] : memref<1x128xf32, #tpu.memory_space<vmem>>, vector<1x128xf32>
    %4 = vector.broadcast %3 : vector<1x128xf32> to vector<8x128xf32>
    %5 = arith.addf %2, %4 : vector<8x128xf32>
    %c0_5 = arith.constant 0 : index
    %c0_6 = arith.constant 0 : index
    %6 = vector.load %arg5[%c0_5, %c0_6] : memref<8x128xf32, #tpu.memory_space<vmem>>, vector<8x128xf32>
    tpu.vector_store %arg5[%c0_5, %c0_6], %5 {strides = array<i32>} : memref<8x128xf32, #tpu.memory_space<vmem>>, vector<8x128xf32>,
    return
  }
  func.func @transform_0(%arg0: i32, %arg1: i32) -> (i32, i32) {
    %c0_i32 = arith.constant 0 : i32
    %c0_i32_0 = arith.constant 0 : i32
    return %arg0, %c0_i32 : i32, i32
  }
  func.func @transform_1(%arg0: i32, %arg1: i32) -> (i32, i32) {
    %c0_i32 = arith.constant 0 : i32
    %c0_i32_0 = arith.constant 0 : i32
    return %c0_i32, %arg1 : i32, i32
  }
  func.func @transform_2(%arg0: i32, %arg1: i32) -> (i32, i32) {
    %c0_i32 = arith.constant 0 : i32
    %c0_i32_0 = arith.constant 0 : i32
    return %c0_i32, %arg1 : i32, i32
  }
  func.func @transform_3(%arg0: i32, %arg1: i32) -> (i32, i32) {
    %c0_i32 = arith.constant 0 : i32
    return %arg0, %arg1 : i32, i32
  }
}

</mosaic_0001>

<bundles_post_ra>
// kernel: tpu_custom_call.1
= control target key start
LH: loop header
LB: loop body
LE: loop exit
PB: predicated region body
PF: predicated region fallthrough
CT: control target
= control target key end

     0   :  { %8 = vsyncpa [#allocation3], 0  ;;  %s219_s0 = inlined_call_operand.hbm [shape: f32[8,32], index: 0, kind: input, shape index: {}]   ;;  %s220_s1 = inlined_call_operand.hbm [shape: f32[32,128], index: 1, kind: input, shape index: {}]   ;;  %s221_s2 = inlined_call_operand.vmem [shape: f32[1,128], index: 2, kind: input, shape index: {}]   ;;  %s222_s3 = inlined_call_operand.hbm [shape: f32[8,128], index: 3, kind: output, shape index: {}]  }
   0x1   :  { %9 = vsyncpa [#allocation6], 0 }
   0x2   :  { %10 = vsyncpa [#allocation4], 0  ;;  %s16_s14 = sshll.u32 %s219_s0, 4  ;;  %s182_s15 = smov [#allocation2]   ;;  %s17_s14 = int_to_ptr.hbm [resolvable:$true] %s16_s14 }
   0x3   :  { %s18_s16 = sshll.u32 %s182_s15, 4  ;;  %s26_s19 = sshll.u32 %s220_s1, 4  ;;  %s19_s16 = int_to_ptr.vmem [resolvable:$true] %s18_s16  ;;  %s27_s19 = int_to_ptr.hbm [resolvable:$true] %s26_s19 }
   0x4   :  { %21 = dma.hbm_to_vmem [thread:$0]  %s17_s14, 128, %s19_s16, [#allocation3]  }
   0x5   :  { %s183_s20 = smov [#allocation5]   ;;  %s184_s22 = smov 128  }
   0x6   :  { %s28_s21 = sshll.u32 %s183_s20, 4  ;;  %s185_s23 = smov 8   ;;  %s29_s21 = int_to_ptr.vmem [resolvable:$true] %s28_s21 }
   0x7   :  { %34 = dma.hbm_to_vmem [thread:$0]  %s27_s19, 512, %s29_s21, [#allocation6], %s184_s22, %s184_s22, %s185_s23  }
   0x8   :  { %176 = dma.done.wait [#allocation3], 128  }
   0x9   :  { %177 = vsyncadd [#allocation3], 4294967168 }
   0xa   :  { %178 = dma.done.wait [#allocation6], 512  }
   0xb   :  { %179 = vsyncadd [#allocation6], 4294966784  ;;  %v49_v0 = vld [vmem:[#allocation5 + $0x18] sm:$0xff]  ;;  %v48_v1 = vld [vmem:[#allocation5 + $0x10] sm:$0xff]  ;;  %vm54_vm0 = vcmask 261120   ;;  %s186_s24 = smov [#allocation7]  }
   0xc   :  { %70 = vmatpush.msra.mxu0 %v49_v0  ;;  %v47_v2 = vld [vmem:[#allocation5 + $0x8] sm:$0xff]  ;;  %v46_v3 = vld [vmem:[#allocation5] sm:$0xff]  ;;  %v45_v4 = vld [vmem:[#allocation2] sm:$0xff]  ;;  %s84_s25 = sshll.u32 %s186_s24, 4  ;;  %s86_s28 = sshll.u32 %s222_s3, 4  ;;  %s85_s25 = int_to_ptr.vmem [resolvable:$true] %s84_s25  ;;  %s87_s28 = int_to_ptr.hbm [resolvable:$true] %s86_s28 }
   0xd   :  { %v103_v5 = vld [vmem:[%s221_s2] ss:$0 sm:$0xff] }
   0xe   :  { %71 = vmatpush.msra.mxu0 %v48_v1 }
  0x10   :  { %72 = vmatpush.msra.mxu0 %v47_v2 }
  0x12   :  { %73 = vmatpush.msra.mxu0 %v46_v3 }
  0x13   :  { %97 = vmatmul.msk.f32.vlgmr.msra.gmra.mxu0 %vm54_vm0, %v45_v4 }
  0x90   :  { %v75_v6 = vpop.f32.mrf.mxu0 }
  0x91   :  { %v76_v7 = vadd.f32 %v103_v5, %v75_v6 }
  0x93   :  { %78 = vst [vmem:[#allocation7] sm:$0xff] %v76_v7 }
  0x94   :  { %89 = dma.vmem_to_hbm [thread:$0]  %s85_s25, 128, %s87_s28, [#allocation4]  }
  0x95   :  { %180 = dma.done.wait [#allocation4], 128  }
  0x96   :  { %181 = vsyncadd [#allocation4], 4294967168 }
  0x97   :  { %94 = vsyncpa [#allocation3], 1 }
  0x98   :  { %95 = vsyncpa [#allocation6], 1 }
  0x99   :  { %96 = vsyncpa [#allocation4], 1 }

</bundles_post_ra>
